<compile_context>
chip_gen: v5e
topology: v5e:2x2
jax: 0.10.0
libtpu: 0.0.40
codegen_flags: <defaults>
</compile_context>

<pallas_src>
import jax
import jax.numpy as jnp
from jax import lax
from jax.experimental import pallas as pl
from jax.experimental.pallas import tpu as pltpu


def linear_kernel(x_ref, w_ref, b_ref, o_ref):
    # x_ref: (B, IN) f32   w_ref: (OUT, IN) f32 (torch layout)   b_ref: (1, OUT)
    x = x_ref[...]
    w = w_ref[...]
    # Contract K axis of both operands: (B, IN) x (OUT, IN) -> (B, OUT).
    acc = lax.dot_general(
        x, w,
        dimension_numbers=(((1,), (1,)), ((), ())),
        preferred_element_type=jnp.float32,
    )
    o_ref[...] = (acc + b_ref[...]).astype(o_ref.dtype)


def linear_pallas(x, weight, bias):
    """x: (B, IN) f32; weight: (OUT, IN) f32 (torch layout); bias: (OUT,) f32."""
    B, IN = x.shape
    OUT = weight.shape[0]
    b2 = bias.reshape(1, OUT)  # metadata-only reshape for lane-major 2-D layout

    vmem = lambda: pl.BlockSpec(memory_space=pltpu.MemorySpace.VMEM)
    return pl.pallas_call(
        linear_kernel,
        out_shape=jax.ShapeDtypeStruct((B, OUT), x.dtype),
        in_specs=[vmem(), vmem(), vmem()],
        out_specs=vmem(),
    )(x, weight, b2)


if __name__ == "__main__":
    key = jax.random.PRNGKey(0)
    kx, kw, kb = jax.random.split(key, 3)

    B, IN, OUT = 8, 10, 5
    x = jax.random.normal(kx, (B, IN), dtype=jnp.float32)
    # Deterministic "parameters" mimicking nn.Linear(10, 5): weight (5, 10), bias (5,)
    bound = 1.0 / (IN ** 0.5)
    weight = jax.random.uniform(kw, (OUT, IN), dtype=jnp.float32,
                                minval=-bound, maxval=bound)
    bias = jax.random.uniform(kb, (OUT,), dtype=jnp.float32,
                              minval=-bound, maxval=bound)

    out = linear_pallas(x, weight, bias)
    out = jax.block_until_ready(out)

    # Reference check against plain JAX
    ref = x @ weight.T + bias
    assert out.shape == (B, OUT)
    assert jnp.allclose(out, ref, atol=1e-5, rtol=1e-5)

    print("KERNEL_OK")
</pallas_src>

<mosaic_0001>
module attributes {stable_mosaic.version = 11 : i64} {
  func.func @linear_kernel(%arg0: memref<8x10xf32, #tpu.memory_space<vmem>>, %arg1: memref<5x10xf32, #tpu.memory_space<vmem>>, %arg2: memref<1x5xf32, #tpu.memory_space<vmem>>, %arg3: memref<8x5xf32, #tpu.memory_space<vmem>>) attributes {dimension_semantics = [], scalar_prefetch = 0 : i64, scratch_operands = 0 : i64, tpu.core_type = #tpu.core_type<tc>} {
    %c0 = arith.constant 0 : index
    %c0_0 = arith.constant 0 : index
    %0 = vector.load %arg0[%c0, %c0_0] : memref<8x10xf32, #tpu.memory_space<vmem>>, vector<8x10xf32>
    %c0_1 = arith.constant 0 : index
    %c0_2 = arith.constant 0 : index
    %1 = vector.load %arg1[%c0_1, %c0_2] : memref<5x10xf32, #tpu.memory_space<vmem>>, vector<5x10xf32>
    %cst = arith.constant dense<0.000000e+00> : vector<8x5xf32>
    %2 = tpu.matmul %0, %1, %cst {dimension_numbers = #tpu.dot_dimension_numbers<[1], [1], [0], [0], [0, 0, 1, 0], [], []>} : vector<8x10xf32>, vector<5x10xf32>, vector<8x5xf32> -> vector<8x5xf32>
    %c0_3 = arith.constant 0 : index
    %c0_4 = arith.constant 0 : index
    %3 = vector.load %arg2[%c0_3, %c0_4] : memref<1x5xf32, #tpu.memory_space<vmem>>, vector<1x5xf32>
    %4 = vector.broadcast %3 : vector<1x5xf32> to vector<8x5xf32>
    %5 = arith.addf %2, %4 : vector<8x5xf32>
    %c0_5 = arith.constant 0 : index
    %c0_6 = arith.constant 0 : index
    %6 = vector.load %arg3[%c0_5, %c0_6] : memref<8x5xf32, #tpu.memory_space<vmem>>, vector<8x5xf32>
    tpu.vector_store %arg3[%c0_5, %c0_6], %5 {strides = array<i32>} : memref<8x5xf32, #tpu.memory_space<vmem>>, vector<8x5xf32>,
    return
  }
}

</mosaic_0001>

<bundles_post_ra>
// kernel: tpu_custom_call.1
= control target key start
LH: loop header
LB: loop body
LE: loop exit
PB: predicated region body
PF: predicated region fallthrough
CT: control target
= control target key end

     0   :  { %8 = vsyncpa [#allocation3], 0  ;;  %s215_s0 = inlined_call_operand.hbm [shape: f32[8,10], index: 0, kind: input, shape index: {}]   ;;  %s216_s1 = inlined_call_operand.hbm [shape: f32[5,10], index: 1, kind: input, shape index: {}]   ;;  %s217_s2 = inlined_call_operand.vmem [shape: f32[1,5], index: 2, kind: input, shape index: {}]   ;;  %s218_s3 = inlined_call_operand.hbm [shape: f32[8,5], index: 3, kind: output, shape index: {}]  }
   0x1   :  { %9 = vsyncpa [#allocation6], 0 }
   0x2   :  { %10 = vsyncpa [#allocation4], 0  ;;  %s16_s14 = sshll.u32 %s215_s0, 4  ;;  %s180_s15 = smov [#allocation2]   ;;  %s17_s14 = int_to_ptr.hbm [resolvable:$true] %s16_s14 }
   0x3   :  { %s18_s16 = sshll.u32 %s180_s15, 4  ;;  %s27_s19 = sshll.u32 %s216_s1, 4  ;;  %s19_s16 = int_to_ptr.vmem [resolvable:$true] %s18_s16  ;;  %s28_s19 = int_to_ptr.hbm [resolvable:$true] %s27_s19 }
   0x4   :  { %21 = dma.hbm_to_vmem [thread:$0]  %s17_s14, 128, %s19_s16, [#allocation3]  }
   0x5   :  { %s181_s20 = smov [#allocation5]  }
   0x6   :  { %s29_s21 = sshll.u32 %s181_s20, 4  ;;  %s30_s21 = int_to_ptr.vmem [resolvable:$true] %s29_s21 }
   0x7   :  { %32 = dma.hbm_to_vmem [thread:$0]  %s28_s19, 128, %s30_s21, [#allocation6]  }
   0x8   :  { %174 = dma.done.wait [#allocation3], 128  }
   0x9   :  { %175 = vsyncadd [#allocation3], 4294967168 }
   0xa   :  { %176 = dma.done.wait [#allocation6], 128  }
   0xb   :  { %177 = vsyncadd [#allocation6], 4294967168  ;;  %vm49_vm0 = vcmask 80896   ;;  %v44_v0 = vld [vmem:[#allocation5] sm:$0x1f]  ;;  %v43_v1 = vld [vmem:[#allocation2] sm:$0xff] }
   0xc   :  { %96 = vmatpush.xpose.msk.msra.mxu0 %vm49_vm0, %v44_v0  ;;  %v101_v2 = vld [vmem:[%s217_s2] ss:$0 sm:$0xff]  ;;  %s182_s1 = smov [#allocation7]   ;;  %s85_s26 = sshll.u32 %s218_s3, 4  ;;  %vm76_vm1 = vcmask 39936   ;;  %s86_s26 = int_to_ptr.hbm [resolvable:$true] %s85_s26 }
   0xd   :  { %s83_s23 = sshll.u32 %s182_s1, 4  ;;  %s84_s23 = int_to_ptr.vmem [resolvable:$true] %s83_s23 }
   0xf   :  { %97 = vmatmul.msk.f32.vlgmr.msra.gmra.mxu0 %vm49_vm0, %v43_v1 }
  0x8c   :  { %v73_v3 = vpop.f32.mrf.mxu0 }
  0x8d   :  { %v74_v4 = vadd.f32 %v101_v2, %v73_v3 }
  0x8f   :  { %77 = vst.msk [vmem:[#allocation7] sm:$0xff] %vm76_vm1, %v74_v4 }
  0x90   :  { %88 = dma.vmem_to_hbm [thread:$0]  %s84_s23, 128, %s86_s26, [#allocation4]  }
  0x91   :  { %178 = dma.done.wait [#allocation4], 128  }
  0x92   :  { %179 = vsyncadd [#allocation4], 4294967168 }
  0x93   :  { %93 = vsyncpa [#allocation3], 1 }
  0x94   :  { %94 = vsyncpa [#allocation6], 1 }
  0x95   :  { %95 = vsyncpa [#allocation4], 1 }

</bundles_post_ra>
